<compile_context>
chip_gen: v7x
topology: tpu7x:2x2x1
jax: 0.10.0
libtpu: 0.0.40
codegen_flags: <defaults>
</compile_context>

<pallas_src>
import functools

import jax
import jax.numpy as jnp
import numpy as np
from jax.experimental import pallas as pl
from jax.experimental.pallas import tpu as pltpu

_COMPUTE_DTYPE = jnp.bfloat16  # MXU input dtype; accumulation stays f32.


def _fused_attention_kernel(x_ref, wqkv_ref, wproj_ref, bproj_ref, o_ref, *,
                            num_heads, seq_len, scale):
    """QKV proj + multi-head attention + output proj for one batch tile."""
    R, C = x_ref.shape                       # R = bt * N rows
    H = num_heads
    N = seq_len
    bt = R // N
    hd = C // H
    HB = H * bt                              # fused (head, batch-tile) dim

    # ---- QKV projection: one full-width MXU matmul (cast x in-kernel) ----
    x = x_ref[...].astype(_COMPUTE_DTYPE)
    qkv = jnp.dot(x, wqkv_ref[...],
                  preferred_element_type=jnp.float32)        # (R, 3C) f32

    # ---- Head split via static lane slices (head-major batch dim) ----
    def gather_heads(col0):
        parts = [qkv[:, col0 + h * hd: col0 + (h + 1) * hd] for h in range(H)]
        zh = jnp.stack(parts, axis=0)                        # (H, R, hd)
        return zh.reshape(HB, N, hd)                         # (H*bt, N, hd)

    q = (gather_heads(0) * scale).astype(_COMPUTE_DTYPE)     # fold scale into q
    k = gather_heads(C).astype(_COMPUTE_DTYPE)
    v = gather_heads(2 * C).astype(_COMPUTE_DTYPE)

    # ---- Scores + numerically-stable softmax (f32; v5e-safe) ----
    s = jnp.einsum('bqd,bkd->bqk', q, k,
                   preferred_element_type=jnp.float32)       # (HB, N, N)
    m = jnp.max(s, axis=-1, keepdims=True)
    e = jnp.exp(s - m)
    denom = jnp.sum(e, axis=-1, keepdims=True)               # (HB, N, 1)

    # ---- Context with deferred normalization (reciprocal on the EUP) ----
    ctx = jnp.einsum('bqk,bkd->bqd', e.astype(_COMPUTE_DTYPE), v,
                     preferred_element_type=jnp.float32)     # (HB, N, hd)
    ctx = ctx * pl.reciprocal(denom, approx=True)

    # ---- Repack (H*bt, N, hd) -> (R, C): head-major concat along lanes ----
    ctx_h = ctx.reshape(H, bt * N, hd)
    ctx2d = jnp.concatenate([ctx_h[h] for h in range(H)], axis=-1)  # (R, C)

    # ---- Output projection: single (R, C) @ (C, C) matmul + bias ----
    out = jnp.dot(ctx2d.astype(_COMPUTE_DTYPE), wproj_ref[...],
                  preferred_element_type=jnp.float32)        # (R, C)
    out = out + bproj_ref[...]                               # bias (1, C)
    o_ref[...] = out.astype(o_ref.dtype)


def _pick_batch_tile(B, N, H, hd, C, *, target_rows=256,
                     vmem_budget_bytes=40 * 1024 * 1024):
    """Pick the batch tile: >= 2 grid steps when possible (v7x dual TC),
    >= target_rows matmul rows when it fits, and within a VMEM budget."""
    def est_vmem(bt):
        R = bt * N
        io = 2 * 2 * R * C * 4                    # x + out blocks, double-buffered
        w = (3 * C * C + C * C) * 2 + C * 4       # resident bf16 weights + f32 bias
        qkv = R * 3 * C * 4                       # projection result (f32)
        attn = 2 * bt * H * N * N * 4             # scores + exp (f32)
        ctx = 2 * bt * H * N * hd * 4 + R * C * 4
        return io + w + qkv + attn + ctx

    divisors = [d for d in range(1, B + 1) if B % d == 0]
    # BlockSpec sublane rule: block rows must be a multiple of 8 or full extent.
    legal = [d for d in divisors if (d * N) % 8 == 0 or d == B] or [B]
    # Prefer >= 2 grid steps so both TensorCores get work on v7x.
    cands = [d for d in legal if (B // d) >= 2] or legal
    fits = [d for d in cands if est_vmem(d) <= vmem_budget_bytes] or [min(cands)]
    for bt in sorted(fits):
        if bt * N >= target_rows:
            return bt
    return max(fits)


@functools.partial(jax.jit, static_argnames=("num_heads",))
def attention_pallas(x, wqkv_t, wproj_t, bproj, *, num_heads):
    B, N, C = x.shape
    H = num_heads
    hd = C // H
    scale = hd ** -0.5

    bt = _pick_batch_tile(B, N, H, hd, C)
    grid = (B // bt,)
    R = bt * N

    x2d = x.reshape(B * N, C)                          # metadata-only reshape
    wqkv_c = wqkv_t.astype(_COMPUTE_DTYPE)             # (C, 3C) resident weight
    wproj_c = wproj_t.astype(_COMPUTE_DTYPE)           # (C, C)  resident weight
    bproj_f = bproj.reshape(1, C).astype(jnp.float32)  # (1, C)  resident bias

    kernel = functools.partial(_fused_attention_kernel,
                               num_heads=H, seq_len=N, scale=scale)

    out2d = pl.pallas_call(
        kernel,
        out_shape=jax.ShapeDtypeStruct((B * N, C), x.dtype),
        grid_spec=pltpu.PrefetchScalarGridSpec(
            num_scalar_prefetch=0,
            grid=grid,
            in_specs=[
                pl.BlockSpec((R, C), lambda i: (i, 0)),         # x rows (streamed)
                pl.BlockSpec((C, 3 * C), lambda i: (0, 0)),     # qkv weight^T
                pl.BlockSpec((C, C), lambda i: (0, 0)),         # proj weight^T
                pl.BlockSpec((1, C), lambda i: (0, 0)),         # proj bias
            ],
            out_specs=pl.BlockSpec((R, C), lambda i: (i, 0)),
        ),
        compiler_params=pltpu.CompilerParams(
            dimension_semantics=("parallel",),
            vmem_limit_bytes=64 * 1024 * 1024),
    )(x2d, wqkv_c, wproj_c, bproj_f)

    return out2d.reshape(B, N, C)


def attention_reference(x, wqkv_t, wproj_t, bproj, *, num_heads):
    """Pure-JAX f32 reference mirroring the PyTorch forward (eval mode)."""
    B, N, C = x.shape
    hd = C // num_heads
    scale = hd ** -0.5
    qkv = x @ wqkv_t                                  # (B, N, 3C)
    qkv = qkv.reshape(B, N, 3, num_heads, hd).transpose(2, 0, 3, 1, 4)
    q, k, v = qkv[0], qkv[1], qkv[2]                  # (B, H, N, hd)
    attn = jnp.einsum('bhqd,bhkd->bhqk', q, k) * scale
    attn = jax.nn.softmax(attn, axis=-1)
    out = jnp.einsum('bhqk,bhkd->bhqd', attn, v)      # (B, H, N, hd)
    out = out.transpose(0, 2, 1, 3).reshape(B, N, C)
    return out @ wproj_t + bproj                      # bias broadcast (1, C)


if __name__ == "__main__":
    # Small shapes consistent with the module: dim=32, num_heads=8 (head_dim=4)
    B, N, C = 2, 8, 32
    NUM_HEADS = 8

    key = jax.random.PRNGKey(0)
    kx, kw1, kw2, kb = jax.random.split(key, 4)

    x = jax.random.normal(kx, (B, N, C), dtype=jnp.float32)
    # PyTorch Linear weights are (out, in) and compute x @ W.T; we build the
    # transposed matrices directly (deterministic synthetic init).
    wqkv_t = jax.random.normal(kw1, (C, 3 * C), dtype=jnp.float32) * 0.05
    wproj_t = jax.random.normal(kw2, (C, C), dtype=jnp.float32) * 0.05
    bproj = jax.random.normal(kb, (1, C), dtype=jnp.float32) * 0.05

    out = attention_pallas(x, wqkv_t, wproj_t, bproj, num_heads=NUM_HEADS)
    out = jax.block_until_ready(out)

    ref = attention_reference(x, wqkv_t, wproj_t, bproj, num_heads=NUM_HEADS)
    # bf16 MXU inputs + approx reciprocal => compare against f32 reference
    # with bf16-level tolerance.
    np.testing.assert_allclose(np.asarray(out), np.asarray(ref),
                               rtol=2e-2, atol=2e-2)

    print("KERNEL_OK")
</pallas_src>

<mosaic_0001>
module attributes {stable_mosaic.version = 11 : i64} {
  func.func @_fused_attention_kernel(%arg0: i32, %arg1: memref<8x32xf32, #tpu.memory_space<vmem>>, %arg2: memref<32x96xbf16, #tpu.memory_space<vmem>>, %arg3: memref<32x32xbf16, #tpu.memory_space<vmem>>, %arg4: memref<1x32xf32, #tpu.memory_space<vmem>>, %arg5: memref<8x32xf32, #tpu.memory_space<vmem>>) attributes {dimension_semantics = [#tpu.dimension_semantics<parallel>], iteration_bounds = array<i64: 2>, scalar_prefetch = 0 : i64, scratch_operands = 0 : i64, tpu.core_type = #tpu.core_type<tc>, window_params = [{transform_indices = @transform_0, window_bounds = array<i64: 8, 32>}, {pipeline_mode = #tpu.pipeline_mode<synchronous>, transform_indices = @transform_1, window_bounds = array<i64: 32, 96>}, {pipeline_mode = #tpu.pipeline_mode<synchronous>, transform_indices = @transform_2, window_bounds = array<i64: 32, 32>}, {pipeline_mode = #tpu.pipeline_mode<synchronous>, transform_indices = @transform_3, window_bounds = array<i64: 1, 32>}, {transform_indices = @transform_4, window_bounds = array<i64: 8, 32>}]} {
    %c0 = arith.constant 0 : index
    %c0_0 = arith.constant 0 : index
    %0 = vector.load %arg1[%c0, %c0_0] : memref<8x32xf32, #tpu.memory_space<vmem>>, vector<8x32xf32>
    %1 = arith.truncf %0 : vector<8x32xf32> to vector<8x32xbf16>
    %c0_1 = arith.constant 0 : index
    %c0_2 = arith.constant 0 : index
    %2 = vector.load %arg2[%c0_1, %c0_2] : memref<32x96xbf16, #tpu.memory_space<vmem>>, vector<32x96xbf16>
    %cst = arith.constant dense<0.000000e+00> : vector<8x96xf32>
    %3 = tpu.matmul %1, %2, %cst {dimension_numbers = #tpu.dot_dimension_numbers<[1], [0], [0], [1], [0, 0, 1, 1], [], []>} : vector<8x32xbf16>, vector<32x96xbf16>, vector<8x96xf32> -> vector<8x96xf32>
    %4 = vector.extract_strided_slice %3 {offsets = [0, 0], sizes = [8, 4], strides = [1, 1]} : vector<8x96xf32> to vector<8x4xf32>
    %5 = vector.extract_strided_slice %3 {offsets = [0, 4], sizes = [8, 4], strides = [1, 1]} : vector<8x96xf32> to vector<8x4xf32>
    %6 = vector.extract_strided_slice %3 {offsets = [0, 8], sizes = [8, 4], strides = [1, 1]} : vector<8x96xf32> to vector<8x4xf32>
    %7 = vector.extract_strided_slice %3 {offsets = [0, 12], sizes = [8, 4], strides = [1, 1]} : vector<8x96xf32> to vector<8x4xf32>
    %8 = vector.extract_strided_slice %3 {offsets = [0, 16], sizes = [8, 4], strides = [1, 1]} : vector<8x96xf32> to vector<8x4xf32>
    %9 = vector.extract_strided_slice %3 {offsets = [0, 20], sizes = [8, 4], strides = [1, 1]} : vector<8x96xf32> to vector<8x4xf32>
    %10 = vector.extract_strided_slice %3 {offsets = [0, 24], sizes = [8, 4], strides = [1, 1]} : vector<8x96xf32> to vector<8x4xf32>
    %11 = vector.extract_strided_slice %3 {offsets = [0, 28], sizes = [8, 4], strides = [1, 1]} : vector<8x96xf32> to vector<8x4xf32>
    %12 = vector.shape_cast %4 : vector<8x4xf32> to vector<1x8x4xf32>
    %13 = vector.shape_cast %5 : vector<8x4xf32> to vector<1x8x4xf32>
    %14 = vector.shape_cast %6 : vector<8x4xf32> to vector<1x8x4xf32>
    %15 = vector.shape_cast %7 : vector<8x4xf32> to vector<1x8x4xf32>
    %16 = vector.shape_cast %8 : vector<8x4xf32> to vector<1x8x4xf32>
    %17 = vector.shape_cast %9 : vector<8x4xf32> to vector<1x8x4xf32>
    %18 = vector.shape_cast %10 : vector<8x4xf32> to vector<1x8x4xf32>
    %19 = vector.shape_cast %11 : vector<8x4xf32> to vector<1x8x4xf32>
    %20 = tpu.concatenate %12, %13, %14, %15, %16, %17, %18, %19 in 0 : vector<1x8x4xf32>, vector<1x8x4xf32>, vector<1x8x4xf32>, vector<1x8x4xf32>, vector<1x8x4xf32>, vector<1x8x4xf32>, vector<1x8x4xf32>, vector<1x8x4xf32> -> vector<8x8x4xf32>
    %cst_3 = arith.constant 5.000000e-01 : f32
    %21 = vector.broadcast %cst_3 : f32 to vector<8x8x4xf32>
    %22 = arith.mulf %20, %21 : vector<8x8x4xf32>
    %23 = arith.truncf %22 : vector<8x8x4xf32> to vector<8x8x4xbf16>
    %24 = vector.extract_strided_slice %3 {offsets = [0, 32], sizes = [8, 4], strides = [1, 1]} : vector<8x96xf32> to vector<8x4xf32>
    %25 = vector.extract_strided_slice %3 {offsets = [0, 36], sizes = [8, 4], strides = [1, 1]} : vector<8x96xf32> to vector<8x4xf32>
    %26 = vector.extract_strided_slice %3 {offsets = [0, 40], sizes = [8, 4], strides = [1, 1]} : vector<8x96xf32> to vector<8x4xf32>
    %27 = vector.extract_strided_slice %3 {offsets = [0, 44], sizes = [8, 4], strides = [1, 1]} : vector<8x96xf32> to vector<8x4xf32>
    %28 = vector.extract_strided_slice %3 {offsets = [0, 48], sizes = [8, 4], strides = [1, 1]} : vector<8x96xf32> to vector<8x4xf32>
    %29 = vector.extract_strided_slice %3 {offsets = [0, 52], sizes = [8, 4], strides = [1, 1]} : vector<8x96xf32> to vector<8x4xf32>
    %30 = vector.extract_strided_slice %3 {offsets = [0, 56], sizes = [8, 4], strides = [1, 1]} : vector<8x96xf32> to vector<8x4xf32>
    %31 = vector.extract_strided_slice %3 {offsets = [0, 60], sizes = [8, 4], strides = [1, 1]} : vector<8x96xf32> to vector<8x4xf32>
    %32 = vector.shape_cast %24 : vector<8x4xf32> to vector<1x8x4xf32>
    %33 = vector.shape_cast %25 : vector<8x4xf32> to vector<1x8x4xf32>
    %34 = vector.shape_cast %26 : vector<8x4xf32> to vector<1x8x4xf32>
    %35 = vector.shape_cast %27 : vector<8x4xf32> to vector<1x8x4xf32>
    %36 = vector.shape_cast %28 : vector<8x4xf32> to vector<1x8x4xf32>
    %37 = vector.shape_cast %29 : vector<8x4xf32> to vector<1x8x4xf32>
    %38 = vector.shape_cast %30 : vector<8x4xf32> to vector<1x8x4xf32>
    %39 = vector.shape_cast %31 : vector<8x4xf32> to vector<1x8x4xf32>
    %40 = tpu.concatenate %32, %33, %34, %35, %36, %37, %38, %39 in 0 : vector<1x8x4xf32>, vector<1x8x4xf32>, vector<1x8x4xf32>, vector<1x8x4xf32>, vector<1x8x4xf32>, vector<1x8x4xf32>, vector<1x8x4xf32>, vector<1x8x4xf32> -> vector<8x8x4xf32>
    %41 = arith.truncf %40 : vector<8x8x4xf32> to vector<8x8x4xbf16>
    %42 = vector.extract_strided_slice %3 {offsets = [0, 64], sizes = [8, 4], strides = [1, 1]} : vector<8x96xf32> to vector<8x4xf32>
    %43 = vector.extract_strided_slice %3 {offsets = [0, 68], sizes = [8, 4], strides = [1, 1]} : vector<8x96xf32> to vector<8x4xf32>
    %44 = vector.extract_strided_slice %3 {offsets = [0, 72], sizes = [8, 4], strides = [1, 1]} : vector<8x96xf32> to vector<8x4xf32>
    %45 = vector.extract_strided_slice %3 {offsets = [0, 76], sizes = [8, 4], strides = [1, 1]} : vector<8x96xf32> to vector<8x4xf32>
    %46 = vector.extract_strided_slice %3 {offsets = [0, 80], sizes = [8, 4], strides = [1, 1]} : vector<8x96xf32> to vector<8x4xf32>
    %47 = vector.extract_strided_slice %3 {offsets = [0, 84], sizes = [8, 4], strides = [1, 1]} : vector<8x96xf32> to vector<8x4xf32>
    %48 = vector.extract_strided_slice %3 {offsets = [0, 88], sizes = [8, 4], strides = [1, 1]} : vector<8x96xf32> to vector<8x4xf32>
    %49 = vector.extract_strided_slice %3 {offsets = [0, 92], sizes = [8, 4], strides = [1, 1]} : vector<8x96xf32> to vector<8x4xf32>
    %50 = vector.shape_cast %42 : vector<8x4xf32> to vector<1x8x4xf32>
    %51 = vector.shape_cast %43 : vector<8x4xf32> to vector<1x8x4xf32>
    %52 = vector.shape_cast %44 : vector<8x4xf32> to vector<1x8x4xf32>
    %53 = vector.shape_cast %45 : vector<8x4xf32> to vector<1x8x4xf32>
    %54 = vector.shape_cast %46 : vector<8x4xf32> to vector<1x8x4xf32>
    %55 = vector.shape_cast %47 : vector<8x4xf32> to vector<1x8x4xf32>
    %56 = vector.shape_cast %48 : vector<8x4xf32> to vector<1x8x4xf32>
    %57 = vector.shape_cast %49 : vector<8x4xf32> to vector<1x8x4xf32>
    %58 = tpu.concatenate %50, %51, %52, %53, %54, %55, %56, %57 in 0 : vector<1x8x4xf32>, vector<1x8x4xf32>, vector<1x8x4xf32>, vector<1x8x4xf32>, vector<1x8x4xf32>, vector<1x8x4xf32>, vector<1x8x4xf32>, vector<1x8x4xf32> -> vector<8x8x4xf32>
    %59 = arith.truncf %58 : vector<8x8x4xf32> to vector<8x8x4xbf16>
    "tpu.trace_start"() <{level = 10 : i32, message = "bqd,bkd->bqk"}> : () -> ()
    %cst_4 = arith.constant dense<0.000000e+00> : vector<8x8x8xf32>
    %60 = tpu.matmul %23, %41, %cst_4 {dimension_numbers = #tpu.dot_dimension_numbers<[2], [2], [1], [1], [0, 0, 0, 1, 1, 1], [0], [0]>} : vector<8x8x4xbf16>, vector<8x8x4xbf16>, vector<8x8x8xf32> -> vector<8x8x8xf32>
    "tpu.trace_stop"() : () -> ()
    %cst_5 = arith.constant dense<0xFF800000> : vector<8x8xf32>
    %61 = vector.multi_reduction <maximumf>, %60, %cst_5 [2] : vector<8x8x8xf32> to vector<8x8xf32>
    %62 = vector.shape_cast %61 : vector<8x8xf32> to vector<8x8x1xf32>
    %63 = vector.broadcast %62 : vector<8x8x1xf32> to vector<8x8x8xf32>
    %64 = arith.subf %60, %63 : vector<8x8x8xf32>
    %65 = math.exp %64 : vector<8x8x8xf32>
    %cst_6 = arith.constant dense<0.000000e+00> : vector<8x8xf32>
    %66 = vector.multi_reduction <add>, %65, %cst_6 [2] : vector<8x8x8xf32> to vector<8x8xf32>
    %67 = vector.shape_cast %66 : vector<8x8xf32> to vector<8x8x1xf32>
    %68 = arith.truncf %65 : vector<8x8x8xf32> to vector<8x8x8xbf16>
    "tpu.trace_start"() <{level = 10 : i32, message = "bqk,bkd->bqd"}> : () -> ()
    %cst_7 = arith.constant dense<0.000000e+00> : vector<8x8x4xf32>
    %69 = tpu.matmul %68, %59, %cst_7 {dimension_numbers = #tpu.dot_dimension_numbers<[2], [1], [1], [2], [0, 0, 0, 1, 1, 2], [0], [0]>} : vector<8x8x8xbf16>, vector<8x8x4xbf16>, vector<8x8x4xf32> -> vector<8x8x4xf32>
    "tpu.trace_stop"() : () -> ()
    %70 = tpu.reciprocal %67 {approx = true} : vector<8x8x1xf32> -> vector<8x8x1xf32>
    %71 = vector.broadcast %70 : vector<8x8x1xf32> to vector<8x8x4xf32>
    %72 = arith.mulf %69, %71 : vector<8x8x4xf32>
    %73 = vector.extract_strided_slice %72 {offsets = [0, 0, 0], sizes = [1, 8, 4], strides = [1, 1, 1]} : vector<8x8x4xf32> to vector<1x8x4xf32>
    %74 = vector.shape_cast %73 : vector<1x8x4xf32> to vector<8x4xf32>
    %75 = vector.extract_strided_slice %72 {offsets = [1, 0, 0], sizes = [1, 8, 4], strides = [1, 1, 1]} : vector<8x8x4xf32> to vector<1x8x4xf32>
    %76 = vector.shape_cast %75 : vector<1x8x4xf32> to vector<8x4xf32>
    %77 = vector.extract_strided_slice %72 {offsets = [2, 0, 0], sizes = [1, 8, 4], strides = [1, 1, 1]} : vector<8x8x4xf32> to vector<1x8x4xf32>
    %78 = vector.shape_cast %77 : vector<1x8x4xf32> to vector<8x4xf32>
    %79 = vector.extract_strided_slice %72 {offsets = [3, 0, 0], sizes = [1, 8, 4], strides = [1, 1, 1]} : vector<8x8x4xf32> to vector<1x8x4xf32>
    %80 = vector.shape_cast %79 : vector<1x8x4xf32> to vector<8x4xf32>
    %81 = vector.extract_strided_slice %72 {offsets = [4, 0, 0], sizes = [1, 8, 4], strides = [1, 1, 1]} : vector<8x8x4xf32> to vector<1x8x4xf32>
    %82 = vector.shape_cast %81 : vector<1x8x4xf32> to vector<8x4xf32>
    %83 = vector.extract_strided_slice %72 {offsets = [5, 0, 0], sizes = [1, 8, 4], strides = [1, 1, 1]} : vector<8x8x4xf32> to vector<1x8x4xf32>
    %84 = vector.shape_cast %83 : vector<1x8x4xf32> to vector<8x4xf32>
    %85 = vector.extract_strided_slice %72 {offsets = [6, 0, 0], sizes = [1, 8, 4], strides = [1, 1, 1]} : vector<8x8x4xf32> to vector<1x8x4xf32>
    %86 = vector.shape_cast %85 : vector<1x8x4xf32> to vector<8x4xf32>
    %87 = vector.extract_strided_slice %72 {offsets = [7, 0, 0], sizes = [1, 8, 4], strides = [1, 1, 1]} : vector<8x8x4xf32> to vector<1x8x4xf32>
    %88 = vector.shape_cast %87 : vector<1x8x4xf32> to vector<8x4xf32>
    %89 = tpu.concatenate %74, %76, %78, %80, %82, %84, %86, %88 in 1 : vector<8x4xf32>, vector<8x4xf32>, vector<8x4xf32>, vector<8x4xf32>, vector<8x4xf32>, vector<8x4xf32>, vector<8x4xf32>, vector<8x4xf32> -> vector<8x32xf32>
    %90 = arith.truncf %89 : vector<8x32xf32> to vector<8x32xbf16>
    %c0_8 = arith.constant 0 : index
    %c0_9 = arith.constant 0 : index
    %91 = vector.load %arg3[%c0_8, %c0_9] : memref<32x32xbf16, #tpu.memory_space<vmem>>, vector<32x32xbf16>
    %cst_10 = arith.constant dense<0.000000e+00> : vector<8x32xf32>
    %92 = tpu.matmul %90, %91, %cst_10 {dimension_numbers = #tpu.dot_dimension_numbers<[1], [0], [0], [1], [0, 0, 1, 1], [], []>} : vector<8x32xbf16>, vector<32x32xbf16>, vector<8x32xf32> -> vector<8x32xf32>
    %c0_11 = arith.constant 0 : index
    %c0_12 = arith.constant 0 : index
    %93 = vector.load %arg4[%c0_11, %c0_12] : memref<1x32xf32, #tpu.memory_space<vmem>>, vector<1x32xf32>
    %94 = vector.broadcast %93 : vector<1x32xf32> to vector<8x32xf32>
    %95 = arith.addf %92, %94 : vector<8x32xf32>
    %c0_13 = arith.constant 0 : index
    %c0_14 = arith.constant 0 : index
    %96 = vector.load %arg5[%c0_13, %c0_14] : memref<8x32xf32, #tpu.memory_space<vmem>>, vector<8x32xf32>
    tpu.vector_store %arg5[%c0_13, %c0_14], %95 {strides = array<i32>} : memref<8x32xf32, #tpu.memory_space<vmem>>, vector<8x32xf32>,
    return
  }
  func.func @transform_0(%arg0: i32) -> (i32, i32) {
    %c0_i32 = arith.constant 0 : i32
    %c0_i32_0 = arith.constant 0 : i32
    return %arg0, %c0_i32 : i32, i32
  }
  func.func @transform_1(%arg0: i32) -> (i32, i32) {
    %c0_i32 = arith.constant 0 : i32
    %c0_i32_0 = arith.constant 0 : i32
    %c0_i32_1 = arith.constant 0 : i32
    return %c0_i32, %c0_i32_0 : i32, i32
  }
  func.func @transform_2(%arg0: i32) -> (i32, i32) {
    %c0_i32 = arith.constant 0 : i32
    %c0_i32_0 = arith.constant 0 : i32
    %c0_i32_1 = arith.constant 0 : i32
    return %c0_i32, %c0_i32_0 : i32, i32
  }
  func.func @transform_3(%arg0: i32) -> (i32, i32) {
    %c0_i32 = arith.constant 0 : i32
    %c0_i32_0 = arith.constant 0 : i32
    %c0_i32_1 = arith.constant 0 : i32
    return %c0_i32, %c0_i32_0 : i32, i32
  }
  func.func @transform_4(%arg0: i32) -> (i32, i32) {
    %c0_i32 = arith.constant 0 : i32
    %c0_i32_0 = arith.constant 0 : i32
    return %arg0, %c0_i32 : i32, i32
  }
}

</mosaic_0001>

<bundles_post_ra>
// kernel: attention_pallas.1
= control target key start
LH: loop header
LB: loop body
LE: loop exit
PB: predicated region body
PF: predicated region fallthrough
CT: control target
= control target key end

     0   :  { %9 = vsyncpa [#allocation3], 0  ;;  %s2441_s0 = inlined_call_operand.hbm [shape: f32[16,32], index: 0, kind: input, shape index: {}]   ;;  %s2442_s1 = inlined_call_operand.hbm [shape: bf16[32,96], index: 1, kind: input, shape index: {}]   ;;  %s2443_s2 = inlined_call_operand.hbm [shape: bf16[32,32], index: 2, kind: input, shape index: {}]   ;;  %s2444_s3 = inlined_call_operand.hbm [shape: f32[1,32], index: 3, kind: input, shape index: {}]   ;;  %s2445_s4 = inlined_call_operand.hbm [shape: f32[16,32], index: 4, kind: output, shape index: {}]  }
   0x1   :  { %11 = vsyncpa [#allocation3 + $0x1], 0 }
   0x2   :  { %12 = vsyncpa [#allocation6], 0 }
   0x3   :  { %13 = vsyncpa [#allocation9], 0 }
   0x4   :  { %14 = vsyncpa [#allocation4], 0 }
   0x5   :  { %16 = vsyncpa [#allocation4 + $0x1], 0  ;;  %s2024_s15 = smov 0   ;;  %s2026_s16 = smov 0  }
   0x6   :  { %s2028_s17 = smov 0   ;;  %s2030_s18 = smov 0  }
   0x7 LB: > { %s2045_s19 = sadd.s32 4294967295, %s1972_s18   ;;  %s1460_s20 = sadd.s32 4294967294, %s1972_s18   ;;  %s1972_s18 = sphi %s2030_s18, %s2468_s18   ;;  %s1968_s17 = sphi %s2028_s17, %s2467_s17   ;;  %s1964_s16 = sphi %s2026_s16, %s2466_s16   ;;  %s1960_s15 = sphi %s2024_s15, %s2465_s15  }
   0x8   : > { %p42_p0 = scmp.ne.s32.totalorder %s1964_s16, %s1960_s15  ;;  %p2446_p1 = scmp.eq.s32.totalorder %s2045_s19, 0 }
   0x9   : > { %p135_p3 = scmp.eq.s32.totalorder %s1460_s20, 1  ;;  %p1461_p5 = scmp.ge.s32.totalorder %s1972_s18, 1 }
   0xa   : > { %p2054_p4 = por %p2446_p1, %p42_p0  ;;  %p142_p7 = scmp.lt.s32.totalorder %s1972_s18, 3 }
   0xb   : > { %p2059_p6 = por %p135_p3, %p42_p0  ;;  %s1974_s24 = smov [#allocation5]  }
   0xc   : > { %s2449_s21 = scalar_select %p2054_p4, 1, 0 }
   0xd   : > { %s2450_s22 = scalar_select %p2059_p6, 1, 0 }
   0xe   : > { %p2064_p8 = pnand %p1461_p5, %p142_p7  ;;  %s154_s25 = sshll.u32 %s1974_s24, 4  ;;  %s2068_s25 = int_to_ptr.vmem [resolvable:$true] %s154_s25 }
   0xf   : > { %s1975_s27 = smov [#allocation7]   ;;  %s1976_s29 = smov [#allocation8]  }
  0x10   : > { %s2451_s23 = scalar_select %p2064_p8, 1, 0 }
  0x11   : > { %p1667_p9 = pneg %p2064_p8  ;;  %s167_s28 = sshll.u32 %s1975_s27, 4  ;;  %s2079_s28 = int_to_ptr.vmem [resolvable:$true] %s167_s28 }
  0x12   : > { %s2081_s30 = sshll.u32 %s1976_s29, 4  ;;  %s1784_s7 = scalar_lea.hbm %s2442_s1, 256  ;;  %s182_s30 = int_to_ptr.vmem [resolvable:$true] %s2081_s30 }
  0x13   : > { %p2075_p11 = pnand %p1667_p9, %p2446_p1  ;;  %p1785_p12 = scmp.ne.s32.totalorder %s2442_s1, %s1784_s7 }
  0x14   : > { %p1791_p5 = scmp.lt.u32.totalorder %s1784_s7, %s2442_s1 }
  0x15   : > { %p2091_p13 = pneg %p2075_p11 }
  0x17   : > { %p1787_p0 = pnand %p2091_p13, %p1785_p12 }
  0x19   : > { %p1788_p3 = pneg %p1787_p0 }
  0x1b   : > { %p1793_p7 = pnand %p1791_p5, %p1788_p3 }
  0x1d   : > { %1796 = shalt.err (!%p1793_p7)
}
  0x1e   : > { %s1797_s13 = scalar_lea.vmem %s2068_s25, 256  ;;  %p1805_p2 = scmp.lt.s32.totalorder %s2068_s25, %s2068_s25 }
  0x1f   : > { %p1798_p9 = scmp.ne.s32.totalorder %s2068_s25, %s1797_s13  ;;  %p1806_p6 = scmp.lt.s32.totalorder %s1797_s13, %s1797_s13 }
  0x21   : > { %p1800_p10 = pnand %p1798_p9, %p2091_p13  ;;  %p1807_p12 = por %p1806_p6, %p1805_p2 }
  0x23   : > { %p1801_p1 = pneg %p1800_p10 }
  0x25   : > { %p1808_p0 = pnand %p1807_p12, %p1801_p1 }
  0x27   : > { %1811 = shalt.err (!%p1808_p0)
}
  0x28   : > { %s1977_s14 = smov 64   ;;  %s1978_s20 = smov 4  }
  0x29   : > { %1670 = dma.hbm_to_vmem [thread:$0]  (!%p2075_p11), %s2442_s1, 256, %s2068_s25, [#allocation6], %s1977_s14, %s1977_s14, %s1978_s20  }
  0x2a   : > { %s1812_s6 = scalar_lea.hbm %s2443_s2, 256 }
  0x2b   : > { %p1813_p2 = scmp.ne.s32.totalorder %s2443_s2, %s1812_s6  ;;  %p1819_p10 = scmp.lt.u32.totalorder %s1812_s6, %s2443_s2 }
  0x2d   : > { %p1815_p1 = pnand %p1813_p2, %p2091_p13 }
  0x2f   : > { %p1816_p6 = pneg %p1815_p1 }
  0x31   : > { %p1821_p3 = pnand %p1819_p10, %p1816_p6 }
  0x33   : > { %1824 = shalt.err (!%p1821_p3)
}
  0x34   : > { %s1825_s25 = scalar_lea.vmem %s2079_s28, 256  ;;  %p1833_p12 = scmp.lt.s32.totalorder %s2079_s28, %s2079_s28 }
  0x35   : > { %p1826_p5 = scmp.ne.s32.totalorder %s2079_s28, %s1825_s25  ;;  %p1834_p0 = scmp.lt.s32.totalorder %s1825_s25, %s1825_s25 }
  0x37   : > { %p1828_p7 = pnand %p1826_p5, %p2091_p13  ;;  %p1835_p2 = por %p1834_p0, %p1833_p12 }
  0x39   : > { %p1829_p9 = pneg %p1828_p7 }
  0x3b   : > { %p1836_p1 = pnand %p1835_p2, %p1829_p9 }
  0x3d   : > { %1839 = shalt.err (!%p1836_p1)
}
  0x3e   : > { %1673 = dma.hbm_to_vmem [thread:$0]  (!%p2075_p11), %s2443_s2, 256, %s2079_s28, [#allocation6], %s1977_s14, %s1977_s14, %s1978_s20  }
  0x3f   : > { %s1840_s29 = scalar_lea.hbm %s2444_s3, 16 }
  0x40   : > { %p1841_p6 = scmp.ne.s32.totalorder %s2444_s3, %s1840_s29  ;;  %p1847_p5 = scmp.lt.u32.totalorder %s1840_s29, %s2444_s3 }
  0x42   : > { %p1843_p10 = pnand %p1841_p6, %p2091_p13 }
  0x44   : > { %p1844_p3 = pneg %p1843_p10 }
  0x46   : > { %p1849_p7 = pnand %p1847_p5, %p1844_p3 }
  0x48   : > { %1852 = shalt.err (!%p1849_p7)
}
  0x49   : > { %s1853_s9 = scalar_lea.vmem %s182_s30, 16  ;;  %s1860_s28 = scalar_lea.vmem %s182_s30, 32 }
  0x4a   : > { %p1854_p9 = scmp.ne.s32.totalorder %s182_s30, %s1853_s9  ;;  %p1861_p2 = scmp.lt.s32.totalorder %s182_s30, %s182_s30 }
  0x4b   : > { %p1862_p1 = scmp.lt.s32.totalorder %s1860_s28, %s1853_s9 }
  0x4c   : > { %p1856_p12 = pnand %p1854_p9, %p2091_p13 }
  0x4d   : > { %p1863_p4 = por %p1862_p1, %p1861_p2 }
  0x4e   : > { %p1857_p0 = pneg %p1856_p12 }
  0x50   : > { %p1864_p8 = pnand %p1863_p4, %p1857_p0 }
  0x52   : > { %1867 = shalt.err (!%p1864_p8)
}
  0x53   : > { %1676 = dma.hbm_to_vmem [thread:$0]  (!%p2075_p11), %s2444_s3, 16, %s182_s30, [#allocation9]  }
  0x54   : > { %s2155_s10 = sadd.s32 1, %s1972_s18   ;;  %s29_s26 = sadd.s32 1, %s1968_s17 }
  0x55   : > { %s26_s11 = ssub.s32 %s1972_s18, %s2155_s10  ;;  %p36_p8 = scmp.ne.s32.totalorder %s1968_s17, %s1964_s16 }
  0x56   : > { %p27_p4 = scmp.eq.s32.totalorder %s26_s11, 0  ;;  %p37_p13 = scmp.eq.s32.totalorder %s1972_s18, 0 }
  0x57   : > { %p1688_p6 = scmp.lt.s32.totalorder %s1972_s18, 2  ;;  %p2454_p3 = scmp.eq.s32.totalorder %s2045_s19, 1 }
  0x58   : > { %s2165_s25 = scalar_select %p27_p4, %s1968_s17, %s29_s26  }
  0x59   : > { %p38_p10 = por %p37_p13, %p36_p8  ;;  %p2169_p5 = por %p2454_p3, %p36_p8 }
  0x5a   : > { %s192_s13 = sand.u32 1, %s1968_s17   ;;  %s1467_s24 = sshll.u32 %s1972_s18, 7 }
  0x5b   : > { %s1466_s30 = sshll.u32 %s192_s13, 3  ;;  %s2178_s5 = scalar_lea.hbm %s2441_s0, %s1467_s24 }
  0x5c   : > { %s196_s6 = scalar_lea.vmem [#allocation2], %s1466_s30  ;;  %p2180_p11 = pnand %p1688_p6, %p38_p10 }
  0x5d   : > { %s203_s7 = sshll.u32 %s196_s6, 4  ;;  %s193_s9 = scalar_lea.sflag [#allocation3], %s192_s13  ;;  %s2184_s7 = int_to_ptr.vmem [resolvable:$true] %s203_s7 }
  0x5e   : > { %s1868_s28 = scalar_lea.hbm %s2178_s5, 128  ;;  %p1870_p9 = pneg %p2180_p11 }
  0x5f   : > { %p1869_p7 = scmp.ne.s32.totalorder %s2178_s5, %s1868_s28  ;;  %s1873_s11 = scalar_lea.hbm %s2441_s0, 256 }
  0x60   : > { %p1874_p2 = scmp.lt.u32.totalorder %s2178_s5, %s2441_s0  ;;  %p1875_p1 = scmp.lt.u32.totalorder %s1873_s11, %s1868_s28 }
  0x61   : > { %p1871_p12 = pnand %p1870_p9, %p1869_p7  ;;  %p1877_p8 = scmp.lt.u32.totalorder %s1868_s28, %s2178_s5 }
  0x62   : > { %p1876_p4 = por %p1875_p1, %p1874_p2 }
  0x63   : > { %p1872_p0 = pneg %p1871_p12 }
  0x64   : > { %p1878_p13 = por %p1877_p8, %p1876_p4 }
  0x66   : > { %p1879_p6 = pnand %p1878_p13, %p1872_p0 }
  0x68   : > { %1882 = shalt.err (!%p1879_p6)
}
  0x69   : > { %s1883_s13 = scalar_lea.vmem %s2184_s7, 128  ;;  %s1979_s30 = smov [#allocation2]  }
  0x6a   : > { %p1884_p10 = scmp.ne.s32.totalorder %s2184_s7, %s1883_s13  ;;  %s1888_s27 = sshll.u32 %s1979_s30, 4  ;;  %s1889_s27 = int_to_ptr.vmem [resolvable:$false] %s1888_s27 }
  0x6b   : > { %s1890_s29 = scalar_lea.vmem %s1889_s27, 256  ;;  %p1891_p12 = scmp.lt.s32.totalorder %s2184_s7, %s1889_s27 }
  0x6c   : > { %p1886_p3 = pnand %p1884_p10, %p1870_p9  ;;  %p1892_p2 = scmp.lt.s32.totalorder %s1890_s29, %s1883_s13 }
  0x6e   : > { %p1887_p7 = pneg %p1886_p3  ;;  %p1893_p1 = por %p1892_p2, %p1891_p12 }
  0x70   : > { %p1894_p4 = pnand %p1893_p1, %p1887_p7 }
  0x72   : > { %1897 = shalt.err (!%p1894_p4)
}
  0x73   : > { %1680 = dma.hbm_to_vmem [thread:$0]  (!%p2180_p11), %s2178_s5, 128, %s2184_s7, %s193_s9  }
  0x74   : > { %p2457_p0 = scmp.ne.s32.totalorder %s2451_s23, 0 }
  0x75   : > { %s2214_s6 = sand.u32 (!%p2457_p0), 1, %s1964_s16   ;;  %p2458_p9 = scmp.ne.s32.totalorder (!%p2457_p0), %s2449_s21, 0 }
  0x76   : > { %212 = sbr.rel (%p2457_p0) target bundleno = 1593 (0x639), region = 36  ;;  %s1469_s28 = sshll.u32 (!%p2457_p0), %s2214_s6, 3 }
  0x77   : > { %s215_s14 = scalar_lea.sflag (!%p2457_p0), [#allocation3], %s2214_s6  ;;  %s218_s20 = scalar_lea.vmem (!%p2457_p0), [#allocation2], %s1469_s28 }
  0x7d   : > { %1943 = dma.done.wait (%p2458_p9), %s215_s14, 128  }
  0x7e   : > { %1945 = vsyncadd (%p2458_p9), %s215_s14, 4294967168  ;;  %p2459_p11 = scmp.eq.s32.totalorder %s2045_s19, 0 }
  0x80   : > { %1947 = dma.done.wait (%p2459_p11), [#allocation6], 512   ;;  %p2460_p8 = pmov %p2459_p11 }
  0x82   : > { %1949 = vsyncadd (%p2460_p8), [#allocation6], 4294966784  ;;  %p2461_p13 = pmov %p2460_p8 }
  0x83   : > { %p2462_p6 = pmov %p2460_p8 }
  0x84   : > { %1951 = dma.done.wait (%p2461_p13), [#allocation9], 16  }
  0x85   : > { %1953 = vsyncadd (%p2462_p6), [#allocation9], 4294967280  ;;  %v1980_v0 = vmov 0.0   ;;  %vm1981_vm0 = vmmov 0   ;;  %v1748_v1 = vld [vmem:[#allocation5] sm:$0xff]   ;;  %v1749_v2 = vld [vmem:[#allocation5 + $0x8] sm:$0xff]  }
  0x86   : > { %1539 = vmatprep.subr.bf16.mxu0 %v1980_v0  ;;  %1543 = vmatprep.mubr.msk.bf16.mxu0 %vm1981_vm0, %v1980_v0  ;;  %v256_v3 = vld [vmem:[%s218_s20] sm:$0xff]  ;;  %vm274_vm1 = vcmask 261120   ;;  %s1982_s21 = smov 116   ;;  %s1983_s23 = smov 124   ;;  %vm367_vm2 = vcmask 31744   ;;  %vm843_vm3 = vcmask 1043456  }
  0x87   : > { %1547 = vmatprep.subr.bf16.mxu1 %v1980_v0  ;;  %1549 = vmatprep.mubr.msk.bf16.mxu1 %vm1981_vm0, %v1980_v0  ;;  %v257_v4 = vpack.c.bf16 %v256_v3, %v256_v3  ;;  %s1984_s5 = smov 112   ;;  %s1985_s7 = smov 120   ;;  %vm757_vm4 = vcmask 64512   ;;  %vm1269_vm5 = vcmask 97280   ;;  %vm1271_vm6 = vcmask 130048  }
  0x88   : > { %1540 = vmatpush3.bf16.msra.mxu0 %v1748_v1  ;;  %s1986_s8 = smov 104   ;;  %s1987_s9 = smov 108   ;;  %vm1273_vm7 = vcmask 162816   ;;  %vm1275_vm8 = vcmask 195584   ;;  %vm1277_vm9 = vcmask 228352  }
  0x89   : > { %1541 = vmatprep.subr.bf16.mxu0 %v1980_v0  ;;  %s1988_s11 = smov 100   ;;  %s1989_s26 = smov 96  }
  0x8a   : > { %s1990_s24 = smov 64   ;;  %s1991_s13 = smov 4  }
  0x8b   : > { %s1992_s30 = smov 8   ;;  %s1993_s27 = smov 12  }
  0x8c   : > { %1542 = vmatpush3.bf16.msra.mxu0 %v1749_v2  ;;  %s1994_s29 = smov 16   ;;  %s1995_s14 = smov 20  }
  0x8d   : > { %1553 = vmatprep.subr.bf16.mxu0 %v1980_v0  ;;  %s1996_s20 = smov 28  }
  0x8f   : > { %1544 = vmatmul.mubr.msk.bf16.vlgmr.msra.gmra.mrb[0].mxu0 %vm274_vm1, %v257_v4 }
  0x90   : > { %1555 = vmatprep.mubr.msk.bf16.mxu0 %vm1981_vm0, %v1980_v0 }
 0x162   : > { %v312_v5 = vpop.f32.mrb[0].mxu0 }
 0x163   : > { %325 = vrot.lane.b32.xlu1 %v312_v5, %s1982_s21  ;;  %319 = vrot.lane.b32.xlu0 %v312_v5, %s1983_s23  ;;  %v1545_v6 = vpop.f32.mrb[1].mxu0  ;;  %v356_v9 = vpack.c.bf16 %v312_v5, %v312_v5  ;;  %v340_v26 = vmul.f32 0.5, %v312_v5  ;;  %s1997_s21 = smov 24   ;;  %s1498_s23 = sshll.u32 %s2045_s19, 7 }
 0x164   : > { %v315_v7 = vpop.f32.mrb[2].mxu0  ;;  %s1348_s19 = scalar_lea.sflag [#allocation4], %s2214_s6 }
 0x165   : > { %v1546_v8 = vpop.f32.mrb[3].mxu0  ;;  %v348_v27 = vpack.c.bf16 %v340_v26, %v340_v26 }
 0x167   : > { %328 = vrot.lane.b32.xlu1 %v312_v5, %s1984_s5  ;;  %322 = vrot.lane.b32.xlu0 %v312_v5, %s1985_s7  ;;  %s254_s5 = scalar_lea.vmem [#allocation10], %s1469_s28 }
 0x168   : > { %s1361_s7 = sshll.u32 %s254_s5, 4  ;;  %s2398_s7 = int_to_ptr.vmem [resolvable:$true] %s1361_s7 }
 0x169   : > { %s1898_s28 = scalar_lea.vmem %s2398_s7, 128 }
 0x16a   : > { %p1899_p10 = scmp.ne.s32.totalorder %s2398_s7, %s1898_s28 }
 0x16b   : > { %334 = vrot.lane.b32.xlu1 %v312_v5, %s1986_s8  ;;  %331 = vrot.lane.b32.xlu0 %v312_v5, %s1987_s9 }
 0x16c   : > { %p1900_p3 = pnand %p1899_p10, %p2169_p5 }
 0x16e   : > { %p1901_p7 = pneg %p1900_p3 }
 0x16f   : > { %337 = vrot.lane.b32.xlu0 %v312_v5, %s1988_s11  ;;  %365 = vrot.lane.b32.xlu1 %v356_v9, %s1989_s26  ;;  %s2396_s11 = scalar_lea.hbm %s2445_s4, %s1498_s23 }
 0x1d5   : > { %v326_v10 = vpop.permute.xlu1 %325  ;;  %v320_v11 = vpop.permute.xlu0 %319 }
 0x1d6   : > { %v357_v12 = vpack.c.bf16 %v320_v11, %v320_v11  ;;  %v359_v15 = vpack.c.bf16 %v326_v10, %v326_v10  ;;  %v341_v30 = vmul.f32 0.5, %v320_v11  ;;  %v343_v38 = vmul.f32 0.5, %v326_v10 }
 0x1d8   : > { %415 = vrot.lane.b32.xlu0 %v357_v12, %s1989_s26  ;;  %v349_v34 = vpack.c.bf16 %v341_v30, %v341_v30  ;;  %v351_v42 = vpack.c.bf16 %v343_v38, %v343_v38 }
 0x1d9   : > { %v329_v13 = vpop.permute.xlu1 %328  ;;  %v323_v14 = vpop.permute.xlu0 %322 }
 0x1da   : > { %v358_v16 = vpack.c.bf16 %v323_v14, %v323_v14  ;;  %v2245_v19 = vpack.c.bf16 %v329_v13, %v329_v13  ;;  %v342_v35 = vmul.f32 0.5, %v323_v14  ;;  %v344_v43 = vmul.f32 0.5, %v329_v13 }
 0x1dc   : > { %513 = vrot.lane.b32.xlu0 %v359_v15, %s1989_s26  ;;  %464 = vrot.lane.b32.xlu1 %v358_v16, %s1989_s26  ;;  %v350_v39 = vpack.c.bf16 %v342_v35, %v342_v35  ;;  %v352_v46 = vpack.c.bf16 %v344_v43, %v344_v43 }
 0x1dd   : > { %v2243_v17 = vpop.permute.xlu1 %334  ;;  %v332_v18 = vpop.permute.xlu0 %331 }
 0x1de   : > { %v2247_v20 = vpack.c.bf16 %v332_v18, %v332_v18  ;;  %v2255_v23 = vpack.c.bf16 %v2243_v17, %v2243_v17  ;;  %v345_v47 = vmul.f32 0.5, %v332_v18  ;;  %v346_v50 = vmul.f32 0.5, %v2243_v17 }
 0x1e0   : > { %611 = vrot.lane.b32.xlu0 %v2247_v20, %s1989_s26  ;;  %562 = vrot.lane.b32.xlu1 %v2245_v19, %s1989_s26  ;;  %v353_v51 = vpack.c.bf16 %v345_v47, %v345_v47  ;;  %v354_v54 = vpack.c.bf16 %v346_v50, %v346_v50 }
 0x1e1   : > { %v2251_v21 = vpop.permute.xlu0 %337  ;;  %v366_v22 = vpop.permute.xlu1 %365 }
 0x1e2   : > { %v2259_v24 = vpack.c.bf16 %v2251_v21, %v2251_v21  ;;  %v372_v25 = vsel %vm367_vm2, %v366_v22, 0  ;;  %v347_v55 = vmul.f32 0.5, %v2251_v21 }
 0x1e3   : > { %1548 = vmatpush3.bf16.xpose.msra.mxu1 %v372_v25 }
 0x1e4   : > { %709 = vrot.lane.b32.xlu0 %v2259_v24, %s1989_s26  ;;  %660 = vrot.lane.b32.xlu1 %v2255_v23, %s1989_s26  ;;  %v355_v58 = vpack.c.bf16 %v347_v55, %v347_v55  ;;  %s1998_s26 = smov [#allocation10]  }
 0x1e5   : > { %1559 = vmatprep.subr.bf16.mxu1 %v1980_v0 }
 0x1e8   : > { %838 = vrot.lane.b32.xlu0 %v356_v9, %s1990_s24  ;;  %887 = vrot.lane.b32.xlu1 %v357_v12, %s1990_s24 }
 0x1ea   : > { %1550 = vmatmul.mubr.msk.bf16.vlgmr.msra.gmra.mrb[0].mxu1 %vm367_vm2, %v348_v27 }
 0x1eb   : > { %1561 = vmatprep.mubr.msk.bf16.mxu1 %vm1981_vm0, %v1980_v0 }
 0x1ec   : > { %983 = vrot.lane.b32.xlu0 %v359_v15, %s1990_s24  ;;  %935 = vrot.lane.b32.xlu1 %v358_v16, %s1990_s24 }
 0x24a   : > { %v416_v28 = vpop.permute.xlu0 %415 }
 0x24b   : > { %v421_v29 = vsel %vm367_vm2, %v416_v28, 0 }
 0x24c   : > { %1554 = vmatpush3.bf16.xpose.msra.mxu0 %v421_v29 }
 0x24d   : > { %1565 = vmatprep.subr.bf16.mxu0 %v1980_v0 }
 0x24e   : > { %v465_v31 = vpop.permute.xlu1 %464  ;;  %v514_v33 = vpop.permute.xlu0 %513 }
 0x24f   : > { %v470_v32 = vsel %vm367_vm2, %v465_v31, 0  ;;  %v519_v36 = vsel %vm367_vm2, %v514_v33, 0 }
 0x250   : > { %1560 = vmatpush3.bf16.xpose.msra.mxu1 %v470_v32 }
 0x251   : > { %1571 = vmatprep.subr.bf16.mxu1 %v1980_v0 }
 0x252   : > { %v563_v37 = vpop.permute.xlu1 %562  ;;  %v612_v41 = vpop.permute.xlu0 %611 }
 0x253   : > { %1556 = vmatmul.mubr.msk.bf16.vlgmr.msra.gmra.mrb[4].mxu0 %vm367_vm2, %v349_v34  ;;  %v568_v40 = vsel %vm367_vm2, %v563_v37, 0  ;;  %v617_v44 = vsel %vm367_vm2, %v612_v41, 0 }
 0x254   : > { %1566 = vmatpush3.bf16.xpose.msra.mxu0 %v519_v36  ;;  %1567 = vmatprep.mubr.msk.bf16.mxu0 %vm1981_vm0, %v1980_v0 }
 0x255   : > { %1577 = vmatprep.subr.bf16.mxu0 %v1980_v0 }
 0x256   : > { %v661_v45 = vpop.permute.xlu1 %660  ;;  %v710_v48 = vpop.permute.xlu0 %709 }
 0x257   : > { %1562 = vmatmul.mubr.msk.bf16.vlgmr.msra.gmra.mrb[4].mxu1 %vm367_vm2, %v350_v39  ;;  %v666_v49 = vsel %vm367_vm2, %v661_v45, 0  ;;  %v715_v52 = vsel %vm367_vm2, %v710_v48, 0 }
 0x258   : > { %1572 = vmatpush3.bf16.xpose.msra.mxu1 %v568_v40  ;;  %1573 = vmatprep.mubr.msk.bf16.mxu1 %vm1981_vm0, %v1980_v0 }
 0x259   : > { %1583 = vmatprep.subr.bf16.mxu1 %v1980_v0 }
 0x25a   : > { %v839_v53 = vpop.permute.xlu0 %838  ;;  %v888_v57 = vpop.permute.xlu1 %887 }
 0x25b   : > { %1568 = vmatmul.mubr.msk.bf16.vlgmr.msra.gmra.mrb[8].mxu0 %vm367_vm2, %v351_v42  ;;  %v845_v56 = vsel %vm843_vm3, %v839_v53, 0  ;;  %v893_v59 = vsel %vm843_vm3, %v888_v57, 0 }
 0x25c   : > { %1578 = vmatpush3.bf16.xpose.msra.mxu0 %v617_v44  ;;  %1579 = vmatprep.mubr.msk.bf16.mxu0 %vm1981_vm0, %v1980_v0 }
 0x25d   : > { %1589 = vmatprep.subr.bf16.mxu0 %v1980_v0 }
 0x25e   : > { %v936_v39 = vpop.permute.xlu1 %935 }
 0x25f   : > { %1574 = vmatmul.mubr.msk.bf16.vlgmr.msra.gmra.mrb[8].mxu1 %vm367_vm2, %v352_v46  ;;  %v941_v45 = vsel %vm843_vm3, %v936_v39, 0 }
 0x260   : > { %1584 = vmatpush3.bf16.xpose.msra.mxu1 %v666_v49  ;;  %1585 = vmatprep.mubr.msk.bf16.mxu1 %vm1981_vm0, %v1980_v0 }
 0x261   : > { %1595 = vmatprep.subr.bf16.mxu1 %v1980_v0 }
 0x263   : > { %1580 = vmatmul.mubr.msk.bf16.vlgmr.msra.gmra.mrb[12].mxu0 %vm367_vm2, %v353_v51 }
 0x264   : > { %1590 = vmatpush3.bf16.xpose.msra.mxu0 %v715_v52  ;;  %1591 = vmatprep.mubr.msk.bf16.mxu0 %vm1981_vm0, %v1980_v0 }
 0x265   : > { %1601 = vmatprep.subr.bf16.mxu0 %v1980_v0 }
 0x267   : > { %1586 = vmatmul.mubr.msk.bf16.vlgmr.msra.gmra.mrb[12].mxu1 %vm367_vm2, %v354_v54 }
 0x268   : > { %1596 = vmatpush3.bf16.msra.mxu1 %v845_v56  ;;  %1597 = vmatprep.mubr.msk.bf16.mxu1 %vm1981_vm0, %v1980_v0 }
 0x269   : > { %1607 = vmatprep.subr.bf16.mxu1 %v1980_v0 }
 0x26b   : > { %1592 = vmatmul.mubr.msk.bf16.vlgmr.msra.gmra.mrb[16].mxu0 %vm367_vm2, %v355_v58 }
 0x26c   : > { %1602 = vmatpush3.bf16.msra.mxu0 %v893_v59  ;;  %1603 = vmatprep.mubr.msk.bf16.mxu0 %vm1981_vm0, %v1980_v0 }
 0x26d   : > { %1613 = vmatprep.subr.bf16.mxu0 %v1980_v0 }
 0x2bd   : > { %v408_v60 = vpop.f32.mrb[0].mxu1 }
 0x2be   : > { %v1551_v61 = vpop.f32.mrb[1].mxu1  ;;  %v758_v62 = vsel %vm757_vm4, %v408_v60, -inf }
 0x2bf   : > { %759 = vmax.xlane.f32.xlu1 %v758_v62  ;;  %v411_v63 = vpop.f32.mrb[2].mxu1 }
 0x2c0   : > { %v1552_v1 = vpop.f32.mrb[3].mxu1 }
 0x2d0   : > { %1031 = vrot.lane.b32.xlu1 %v2245_v19, %s1990_s24 }
 0x326   : > { %v457_v2 = vpop.f32.mrb[4].mxu0 }
 0x327   : > { %v1557_v3 = vpop.f32.mrb[5].mxu0  ;;  %v761_v4 = vsel %vm757_vm4, %v457_v2, -inf }
 0x328   : > { %762 = vmax.xlane.f32.xlu0 %v761_v4  ;;  %v460_v5 = vpop.f32.mrb[6].mxu0 }
 0x329   : > { %v1558_v6 = vpop.f32.mrb[7].mxu0 }
 0x32a   : > { %v506_v7 = vpop.f32.mrb[4].mxu1 }
 0x32b   : > { %v1563_v8 = vpop.f32.mrb[5].mxu1  ;;  %v764_v9 = vsel %vm757_vm4, %v506_v7, -inf }
 0x32c   : > { %v509_v10 = vpop.f32.mrb[6].mxu1  ;;  %765 = vmax.xlane.f32.xlu0 %v764_v9 }
 0x32d   : > { %v1564_v11 = vpop.f32.mrb[7].mxu1 }
 0x32e   : > { %v555_v12 = vpop.f32.mrb[8].mxu0 }
 0x32f   : > { %v1569_v13 = vpop.f32.mrb[9].mxu0  ;;  %v767_v14 = vsel %vm757_vm4, %v555_v12, -inf }
 0x330   : > { %768 = vmax.xlane.f32.xlu1 %v767_v14  ;;  %v558_v15 = vpop.f32.mrb[10].mxu0 }
 0x331   : > { %v1570_v16 = vpop.f32.mrb[11].mxu0 }
 0x332   : > { %v604_v17 = vpop.f32.mrb[8].mxu1 }
 0x333   : > { %v1575_v18 = vpop.f32.mrb[9].mxu1  ;;  %v770_v19 = vsel %vm757_vm4, %v604_v17, -inf }
 0x334   : > { %v607_v21 = vpop.f32.mrb[10].mxu1  ;;  %771 = vmax.xlane.f32.xlu0 %v770_v19 }
 0x335   : > { %v1576_v22 = vpop.f32.mrb[11].mxu1 }
 0x336   : > { %v653_v25 = vpop.f32.mrb[12].mxu0 }
 0x337   : > { %v1581_v26 = vpop.f32.mrb[13].mxu0  ;;  %v773_v27 = vsel %vm757_vm4, %v653_v25, -inf }
 0x338   : > { %774 = vmax.xlane.f32.xlu1 %v773_v27  ;;  %v656_v28 = vpop.f32.mrb[14].mxu0 }
 0x339   : > { %v1582_v29 = vpop.f32.mrb[15].mxu0 }
 0x33a   : > { %v2321_v30 = vpop.f32.mrb[12].mxu1 }
 0x33b   : > { %v1587_v31 = vpop.f32.mrb[13].mxu1 }
 0x33c   : > { %v705_v32 = vpop.f32.mrb[14].mxu1 }
 0x33d   : > { %v1588_v33 = vpop.f32.mrb[15].mxu1 }
 0x33e   : > { %v2323_v34 = vpop.f32.mrb[16].mxu0 }
 0x33f   : > { %v1593_v35 = vpop.f32.mrb[17].mxu0  ;;  %v779_v36 = vsel %vm757_vm4, %v2323_v34, -inf }
 0x340   : > { %780 = vmax.xlane.f32.xlu1 %v779_v36  ;;  %v754_v37 = vpop.f32.mrb[18].mxu0 }
 0x341   : > { %v1594_v38 = vpop.f32.mrb[19].mxu0 }
 0x34a   : > { %1079 = vrot.lane.b32.xlu0 %v2247_v20, %s1990_s24  ;;  %v776_v20 = vsel %vm757_vm4, %v2321_v30, -inf }
 0x34c   : > { %v760_v40 = vpop.xlane.xlu1 %759 }
 0x34d   : > { %v782_v41 = vsub.f32 %v408_v60, %v760_v40 }
 0x34f   : > { %v790_v42 = vmul.f32 1.442695, %v782_v41 }
 0x350   : > { %v1032_v49 = vpop.permute.xlu1 %1031 }
 0x351   : > { %1752 = vpow2.f32 %v790_v42  ;;  %1127 = vrot.lane.b32.xlu1 %v2255_v23, %s1990_s24  ;;  %v984_v23 = vpop.permute.xlu0 %983  ;;  %v1037_v5 = vsel %vm843_vm3, %v1032_v49, 0 }
 0x352   : > { %v989_v63 = vsel %vm843_vm3, %v984_v23, 0 }
 0x35b   : > { %v2331_v43 = vpop.eup %1752 }
 0x35c   : > { %v830_v44 = vpack.c.bf16 %v2331_v43, %v2331_v43 }
 0x35e   : > { %1598 = vmatmul.mubr.msk.bf16.vlgmr.msra.gmra.mrb[16].mxu1 %vm757_vm4, %v830_v44 }
 0x35f   : > { %1608 = vmatpush3.bf16.msra.mxu1 %v941_v45  ;;  %1609 = vmatprep.mubr.msk.bf16.mxu1 %vm1981_vm0, %v1980_v0 }
 0x360   : > { %1619 = vmatprep.subr.bf16.mxu1 %v1980_v0 }
 0x369   : > { %777 = vmax.xlane.f32.xlu0 %v776_v20 }
 0x37f   : > { %1175 = vrot.lane.b32.xlu0 %v2259_v24, %s1990_s24  ;;  %s1902_s24 = sshll.u32 %s1998_s26, 4  ;;  %s1903_s24 = int_to_ptr.vmem [resolvable:$false] %s1902_s24 }
 0x380   : > { %p1905_p12 = scmp.lt.s32.totalorder %s2398_s7, %s1903_s24 }
 0x3b5   : > { %v763_v46 = vpop.xlane.xlu0 %762 }
 0x3b6   : > { %v783_v47 = vsub.f32 %v457_v2, %v763_v46 }
 0x3b8   : > { %v792_v48 = vmul.f32 1.442695, %v783_v47 }
 0x3b9   : > { %v766_v50 = vpop.xlane.xlu0 %765 }
 0x3ba   : > { %1754 = vpow2.f32 %v792_v48  ;;  %v784_v51 = vsub.f32 %v506_v7, %v766_v50 }
 0x3bc   : > { %v794_v52 = vmul.f32 1.442695, %v784_v51 }
 0x3bd   : > { %v769_v53 = vpop.xlane.xlu1 %768 }
 0x3be   : > { %1756 = vpow2.f32 %v794_v52  ;;  %v785_v54 = vsub.f32 %v555_v12, %v769_v53 }
 0x3c0   : > { %v796_v55 = vmul.f32 1.442695, %v785_v54 }
 0x3c1   : > { %v772_v56 = vpop.xlane.xlu0 %771 }
 0x3c2   : > { %1758 = vpow2.f32 %v796_v55  ;;  %v786_v57 = vsub.f32 %v604_v17, %v772_v56 }
 0x3c4   : > { %v1755_v58 = vpop.eup %1754  ;;  %v798_v59 = vmul.f32 1.442695, %v786_v57 }
 0x3c5   : > { %v775_v60 = vpop.xlane.xlu1 %774  ;;  %v809_v24 = vsel %vm757_vm4, %v1755_v58, 0.0  ;;  %v831_v61 = vpack.c.bf16 %v1755_v58, %v1755_v58  ;;  %v1080_v7 = vpop.permute.xlu0 %1079 }
 0x3c6   : > { %1760 = vpow2.f32 %v798_v59  ;;  %v787_v62 = vsub.f32 %v653_v25, %v775_v60  ;;  %810 = vadd.xlane.f32.xlu1 %v809_v24  ;;  %v1085_v12 = vsel %vm843_vm3, %v1080_v7, 0 }
 0x3c7   : > { %1604 = vmatmul.mubr.msk.bf16.vlgmr.msra.gmra.mrb[20].mxu0 %vm757_vm4, %v831_v61 }
 0x3c8   : > { %v1757_v1 = vpop.eup %1756  ;;  %v800_v2 = vmul.f32 1.442695, %v787_v62  ;;  %1614 = vmatpush3.bf16.msra.mxu0 %v989_v63  ;;  %1615 = vmatprep.mubr.msk.bf16.mxu0 %vm1981_vm0, %v1980_v0 }
 0x3c9   : > { %v812_v3 = vsel %vm757_vm4, %v1757_v1, 0.0  ;;  %v832_v4 = vpack.c.bf16 %v1757_v1, %v1757_v1  ;;  %1625 = vmatprep.subr.bf16.mxu0 %v1980_v0 }
 0x3ca   : > { %1762 = vpow2.f32 %v800_v2  ;;  %813 = vadd.xlane.f32.xlu0 %v812_v3 }
 0x3cb   : > { %1610 = vmatmul.mubr.msk.bf16.vlgmr.msra.gmra.mrb[20].mxu1 %vm757_vm4, %v832_v4 }
 0x3cc   : > { %v1759_v6 = vpop.eup %1758  ;;  %1620 = vmatpush3.bf16.msra.mxu1 %v1037_v5  ;;  %1621 = vmatprep.mubr.msk.bf16.mxu1 %vm1981_vm0, %v1980_v0 }
 0x3cd   : > { %v781_v8 = vpop.xlane.xlu1 %780  ;;  %v815_v9 = vsel %vm757_vm4, %v1759_v6, 0.0  ;;  %v833_v10 = vpack.c.bf16 %v1759_v6, %v1759_v6  ;;  %1631 = vmatprep.subr.bf16.mxu1 %v1980_v0 }
 0x3ce   : > { %v789_v11 = vsub.f32 %v2323_v34, %v781_v8  ;;  %816 = vadd.xlane.f32.xlu0 %v815_v9 }
 0x3cf   : > { %1616 = vmatmul.mubr.msk.bf16.vlgmr.msra.gmra.mrb[24].mxu0 %vm757_vm4, %v833_v10 }
 0x3d0   : > { %v1761_v13 = vpop.eup %1760  ;;  %v804_v14 = vmul.f32 1.442695, %v789_v11  ;;  %1626 = vmatpush3.bf16.msra.mxu0 %v1085_v12  ;;  %1627 = vmatprep.mubr.msk.bf16.mxu0 %vm1981_vm0, %v1980_v0  ;;  %v1750_v11 = vld [vmem:[#allocation7] sm:$0xff]  }
 0x3d1   : > { %v1128_v15 = vpop.permute.xlu1 %1127  ;;  %v818_v16 = vsel %vm757_vm4, %v1761_v13, 0.0  ;;  %v834_v17 = vpack.c.bf16 %v1761_v13, %v1761_v13  ;;  %1637 = vmatprep.subr.bf16.mxu0 %v1980_v0  ;;  %v1751_v13 = vld [vmem:[#allocation7 + $0x8] sm:$0xff]  }
 0x3d2   : > { %1764 = vpow2.f32 %v804_v14  ;;  %v1133_v18 = vsel %vm843_vm3, %v1128_v15, 0  ;;  %819 = vadd.xlane.f32.xlu1 %v818_v16 }
 0x3d3   : > { %1622 = vmatmul.mubr.msk.bf16.vlgmr.msra.gmra.mrb[24].mxu1 %vm757_vm4, %v834_v17 }
 0x3d4   : > { %v1763_v19 = vpop.eup %1762  ;;  %1632 = vmatpush3.bf16.msra.mxu1 %v1133_v18  ;;  %1633 = vmatprep.mubr.msk.bf16.mxu1 %vm1981_vm0, %v1980_v0 }
 0x3d5   : > { %v821_v21 = vsel %vm757_vm4, %v1763_v19, 0.0  ;;  %v835_v22 = vpack.c.bf16 %v1763_v19, %v1763_v19  ;;  %1643 = vmatprep.subr.bf16.mxu1 %v1980_v0 }
 0x3d6   : > { %822 = vadd.xlane.f32.xlu0 %v821_v21 }
 0x3d7   : > { %1628 = vmatmul.mubr.msk.bf16.vlgmr.msra.gmra.mrb[28].mxu0 %vm757_vm4, %v835_v22 }
 0x3d8   : > { %1639 = vmatprep.mubr.msk.bf16.mxu0 %vm1981_vm0, %v1980_v0 }
 0x3dc   : > { %v1765_v25 = vpop.eup %1764 }
 0x3dd   : > { %v827_v26 = vsel %vm757_vm4, %v1765_v25, 0.0  ;;  %v837_v33 = vpack.c.bf16 %v1765_v25, %v1765_v25 }
 0x3de   : > { %828 = vadd.xlane.f32.xlu0 %v827_v26 }
 0x3f6   : > { %v778_v27 = vpop.xlane.xlu0 %777 }
 0x3f7   : > { %v788_v28 = vsub.f32 %v2321_v30, %v778_v27  ;;  %v806_v30 = vsel %vm757_vm4, %v2331_v43, 0.0 }
 0x3f9   : > { %v802_v29 = vmul.f32 1.442695, %v788_v28 }
 0x3fa   : > { %v1176_v31 = vpop.permute.xlu0 %1175 }
 0x3fb   : > { %1766 = vpow2.f32 %v802_v29  ;;  %v1181_v32 = vsel %vm843_vm3, %v1176_v31, 0 }
 0x3fc   : > { %1638 = vmatpush3.bf16.msra.mxu0 %v1181_v32 }
 0x3ff   : > { %1640 = vmatmul.mubr.msk.bf16.vlgmr.msra.gmra.mrb[32].mxu0 %vm757_vm4, %v837_v33 }
 0x405   : > { %v1767_v34 = vpop.eup %1766 }
 0x406   : > { %v824_v35 = vsel %vm757_vm4, %v1767_v34, 0.0  ;;  %v836_v36 = vpack.c.bf16 %v1767_v34, %v1767_v34 }
 0x407   : > { %825 = vadd.xlane.f32.xlu1 %v824_v35 }
 0x408   : > { %1634 = vmatmul.mubr.msk.bf16.vlgmr.msra.gmra.mrb[28].mxu1 %vm757_vm4, %v836_v36 }
 0x409   : > { %1647 = vmatprep.mubr.msk.bf16.mxu1 %vm1981_vm0, %v1980_v0  ;;  %1644 = vmatpush3.bf16.msra.mxu1 %v1750_v11 }
 0x40a   : > { %1645 = vmatprep.subr.bf16.mxu1 %v1980_v0 }
 0x40b   : > { %807 = vadd.xlane.f32.xlu1 %v806_v30 }
 0x40d   : > { %1646 = vmatpush3.bf16.msra.mxu1 %v1751_v13 }
 0x431   : > { %v2383_v37 = vpop.f32.mrb[16].mxu1 }
 0x432   : > { %v1599_v38 = vpop.f32.mrb[17].mxu1 }
 0x433   : > { %v884_v39 = vpop.f32.mrb[18].mxu1 }
 0x434   : > { %v1600_v40 = vpop.f32.mrb[19].mxu1 }
 0x453   : > { %v811_v41 = vpop.xlane.xlu1 %810 }
 0x454   : > { %1768 = vrcp.f32 %v811_v41 }
 0x457   : > { %v814_v42 = vpop.xlane.xlu0 %813 }
 0x458   : > { %1770 = vrcp.f32 %v814_v42 }
 0x45b   : > { %v817_v44 = vpop.xlane.xlu0 %816 }
 0x45c   : > { %1772 = vrcp.f32 %v817_v44 }
 0x45e   : > { %v1769_v20 = vpop.eup %1768 }
 0x45f   : > { %v820_v45 = vpop.xlane.xlu1 %819 }
 0x460   : > { %1774 = vrcp.f32 %v820_v45 }
 0x462   : > { %v1771_v50 = vpop.eup %1770 }
 0x463   : > { %v823_v43 = vpop.xlane.xlu0 %822 }
 0x464   : > { %1776 = vrcp.f32 %v823_v43 }
 0x466   : > { %v1773_v56 = vpop.eup %1772 }
 0x46a   : > { %v1775_v61 = vpop.eup %1774 }
 0x46b   : > { %v829_v10 = vpop.xlane.xlu0 %828 }
 0x46c   : > { %1778 = vrcp.f32 %v829_v10 }
 0x46e   : > { %v1777_v4 = vpop.eup %1776 }
 0x476   : > { %v1779_v14 = vpop.eup %1778 }
 0x494   : > { %v826_v12 = vpop.xlane.xlu1 %825 }
 0x495   : > { %1780 = vrcp.f32 %v826_v12 }
 0x498   : > { %v808_v0 = vpop.xlane.xlu1 %807 }
 0x499   : > { %1782 = vrcp.f32 %v808_v0 }
 0x49a   : > { %v929_v23 = vpop.f32.mrb[20].mxu0 }
 0x49b   : > { %v1232_v46 = vmul.f32 %v1769_v20, %v929_v23  ;;  %v1605_v47 = vpop.f32.mrb[21].mxu0  ;;  %v1493_v23 = vld [vmem:[#allocation8] ss:$0 sm:$0xff] }
 0x49c   : > { %v932_v48 = vpop.f32.mrb[22].mxu0 }
 0x49d   : > { %1240 = vrot.lane.b32.xlu0 %v1232_v46, %s1991_s13  ;;  %v1606_v49 = vpop.f32.mrb[23].mxu0  ;;  %s1904_s13 = scalar_lea.vmem %s1903_s24, 256 }
 0x49e   : > { %v977_v51 = vpop.f32.mrb[20].mxu1  ;;  %p1906_p2 = scmp.lt.s32.totalorder %s1904_s13, %s1898_s28 }
 0x49f   : > { %v1233_v52 = vmul.f32 %v1771_v50, %v977_v51  ;;  %v1611_v53 = vpop.f32.mrb[21].mxu1  ;;  %v1781_v21 = vpop.eup %1780 }
 0x4a0   : > { %v980_v54 = vpop.f32.mrb[22].mxu1  ;;  %p1907_p1 = por %p1906_p2, %p1905_p12 }
 0x4a1   : > { %v1612_v55 = vpop.f32.mrb[23].mxu1  ;;  %1244 = vrot.lane.b32.xlu1 %v1233_v52, %s1992_s30 }
 0x4a2   : > { %v1025_v57 = vpop.f32.mrb[24].mxu0  ;;  %p1908_p4 = pnand %p1907_p1, %p1901_p7 }
 0x4a3   : > { %v1234_v58 = vmul.f32 %v1773_v56, %v1025_v57  ;;  %v1617_v59 = vpop.f32.mrb[25].mxu0  ;;  %v1783_v31 = vpop.eup %1782 }
 0x4a4   : > { %v1028_v60 = vpop.f32.mrb[26].mxu0  ;;  %v1231_v34 = vmul.f32 %v1783_v31, %v2383_v37 }
 0x4a5   : > { %1248 = vrot.lane.b32.xlu1 %v1234_v58, %s1993_s27  ;;  %v1618_v24 = vpop.f32.mrb[27].mxu0 }
 0x4a6   : > { %v1073_v62 = vpop.f32.mrb[24].mxu1 }
 0x4a7   : > { %v1235_v63 = vmul.f32 %v1775_v61, %v1073_v62  ;;  %v1623_v1 = vpop.f32.mrb[25].mxu1 }
 0x4a8   : > { %v1076_v2 = vpop.f32.mrb[26].mxu1 }
 0x4a9   : > { %v1624_v3 = vpop.f32.mrb[27].mxu1  ;;  %1252 = vrot.lane.b32.xlu0 %v1235_v63, %s1994_s29 }
 0x4aa   : > { %v1121_v5 = vpop.f32.mrb[28].mxu0 }
 0x4ab   : > { %v1236_v6 = vmul.f32 %v1777_v4, %v1121_v5  ;;  %v1629_v7 = vpop.f32.mrb[29].mxu0 }
 0x4ac   : > { %v1124_v8 = vpop.f32.mrb[30].mxu0 }
 0x4ad   : > { %1256 = vrot.lane.b32.xlu1 %v1236_v6, %s1995_s14  ;;  %v1630_v9 = vpop.f32.mrb[31].mxu0 }
 0x4d2   : > { %v1217_v15 = vpop.f32.mrb[32].mxu0 }
 0x4d3   : > { %v1238_v16 = vmul.f32 %v1779_v14, %v1217_v15  ;;  %v1641_v17 = vpop.f32.mrb[33].mxu0 }
 0x4d4   : > { %v1220_v18 = vpop.f32.mrb[34].mxu0 }
 0x4d5   : > { %1264 = vrot.lane.b32.xlu1 %v1238_v16, %s1996_s20  ;;  %v1642_v19 = vpop.f32.mrb[35].mxu0 }
 0x4db   : > { %v1169_v22 = vpop.f32.mrb[28].mxu1 }
 0x4dc   : > { %v1237_v25 = vmul.f32 %v1781_v21, %v1169_v22  ;;  %v1635_v26 = vpop.f32.mrb[29].mxu1 }
 0x4dd   : > { %v1172_v27 = vpop.f32.mrb[30].mxu1 }
 0x4de   : > { %v1636_v28 = vpop.f32.mrb[31].mxu1  ;;  %1260 = vrot.lane.b32.xlu0 %v1237_v25, %s1997_s21 }
 0x50f   : > { %v1241_v32 = vpop.permute.xlu0 %1240 }
 0x510   : > { %v1267_v35 = vsel %vm367_vm2, %v1231_v34, %v1241_v32 }
 0x513   : > { %v1245_v29 = vpop.permute.xlu1 %1244 }
 0x514   : > { %v1268_v30 = vsel %vm757_vm4, %v1267_v35, %v1245_v29 }
 0x517   : > { %v1249_v33 = vpop.permute.xlu1 %1248 }
 0x518   : > { %v1270_v39 = vsel %vm1269_vm5, %v1268_v30, %v1249_v33 }
 0x51b   : > { %v1253_v36 = vpop.permute.xlu0 %1252 }
 0x51c   : > { %v1272_v40 = vsel %vm1271_vm6, %v1270_v39, %v1253_v36 }
 0x51f   : > { %v1257_v38 = vpop.permute.xlu1 %1256 }
 0x520   : > { %v1274_v41 = vsel %vm1273_vm7, %v1272_v40, %v1257_v38 }
 0x547   : > { %v1265_v44 = vpop.permute.xlu1 %1264 }
 0x550   : > { %v1261_v42 = vpop.permute.xlu0 %1260 }
 0x551   : > { %v1276_v45 = vsel %vm1275_vm8, %v1274_v41, %v1261_v42 }
 0x552   : > { %v1278_v37 = vsel %vm1277_vm9, %v1276_v45, %v1265_v44 }
 0x553   : > { %v1279_v20 = vpack.c.bf16 %v1278_v37, %v1278_v37 }
 0x555   : > { %1648 = vmatmul.mubr.msk.bf16.vlgmr.msra.gmra.mrb[32].mxu1 %vm274_vm1, %v1279_v20 }
 0x628   : > { %v1340_v46 = vpop.f32.mrb[32].mxu1 }
 0x629   : > { %v1341_v47 = vadd.f32 %v1493_v23, %v1340_v46  ;;  %v1649_v48 = vpop.f32.mrb[33].mxu1 }
 0x62a   : > { %v1343_v43 = vpop.f32.mrb[34].mxu1 }
 0x62b   : > { %v1650_v49 = vpop.f32.mrb[35].mxu1  ;;  %1346 = vst.msk [vmem:[%s254_s5] sm:$0xff] %vm274_vm1, %v1341_v47 }
 0x62c   : > { %1911 = shalt.err (!%p1908_p4)
}
 0x62d   : > { %s1912_s6 = scalar_lea.hbm %s2396_s11, 128  ;;  %s1916_s29 = scalar_lea.hbm %s2445_s4, 256 }
 0x62e   : > { %p1913_p0 = scmp.ne.s32.totalorder %s2396_s11, %s1912_s6  ;;  %p1917_p8 = scmp.lt.u32.totalorder %s2396_s11, %s2445_s4 }
 0x62f   : > { %p1918_p13 = scmp.lt.u32.totalorder %s1916_s29, %s1912_s6  ;;  %p1920_p10 = scmp.lt.u32.totalorder %s1912_s6, %s2396_s11 }
 0x630   : > { %p1914_p9 = pnand %p1913_p0, %p2169_p5 }
 0x631   : > { %p1919_p6 = por %p1918_p13, %p1917_p8 }
 0x632   : > { %p1915_p11 = pneg %p1914_p9 }
 0x633   : > { %p1921_p3 = por %p1920_p10, %p1919_p6 }
 0x635   : > { %p1922_p7 = pnand %p1921_p3, %p1915_p11 }
 0x637   : > { %1925 = shalt.err (!%p1922_p7)
}
 0x638   : > { %1665 = dma.vmem_to_hbm [thread:$0]  (%p2169_p5), %s2398_s7, 128, %s2396_s11, %s1348_s19  }
 0x639 PF: > { %s1373_s21 = sand.u32 1, %s1960_s15   ;;  %p2463_p12 = scmp.ne.s32.totalorder %s2450_s22, 0 }
 0x63a   : > { %p2464_p2 = scmp.ge.s32.totalorder %s1972_s18, 2  ;;  %s1374_s23 = scalar_lea.sflag [#allocation4], %s1373_s21 }
 0x63c   : > { %p1682_p1 = pnand %p2464_p2, %p2463_p12 }
 0x63e   : > { %1955 = dma.done.wait (!%p1682_p1), %s1374_s23, 128  }
 0x63f   : > { %1957 = vsyncadd (!%p1682_p1), %s1374_s23, 4294967168  ;;  %p19_p4 = scmp.ge.s32.totalorder %s2155_s10, 4   ;;  %s2465_s15 = smov %s1964_s16 }
 0x640   : > { %s2466_s16 = smov %s1968_s17  ;;  %s2467_s17 = smov %s2165_s25 }
 0x641   : > { %s2468_s18 = smov %s2155_s10  ;;  %21 = sbr.rel (!%p19_p4) target bundleno = 7 (0x7), region = 93 }
 0x648   :  { %1379 = vsyncpa [#allocation3], 1 }
 0x649   :  { %1381 = vsyncpa [#allocation3 + $0x1], 1 }
 0x64a   :  { %1382 = vsyncpa [#allocation6], 1 }
 0x64b   :  { %1383 = vsyncpa [#allocation9], 1 }
 0x64c   :  { %1384 = vsyncpa [#allocation4], 1 }
 0x64d   :  { %1386 = vsyncpa [#allocation4 + $0x1], 1 }

</bundles_post_ra>
